<compile_context>
chip_gen: v7x
topology: tpu7x:2x2x1
jax: 0.10.0
libtpu: 0.0.40
codegen_flags: <defaults>
</compile_context>

<pallas_src>
import numpy as np
import jax
import jax.numpy as jnp
from jax.experimental import pallas as pl
from jax.experimental.pallas import tpu as pltpu

B, S = 2, 8          # batch, sequence length
EMB = 16             # config.emb_size
HID = 32             # config.hidden_size
LABEL = 4            # config.label_size
VOCAB = 50           # vocab.voc_size
NUM_LAYERS = 2       # config.num_layers
F32 = jnp.float32


def slstm_kernel(x_ref, mask_ref, h0_ref, c0_ref,
                 wseq_ref, wg_ref, bg_ref, uavg_ref, wout_ref, woutb_ref,
                 logits_ref,
                 h_sc, c_sc, g_sc, cg_sc):
    layer = pl.program_id(1)
    _, Sk, H = h_sc.shape

    # ---- layer 0: initialize recurrent state (init_g / init_c_g are seq means)
    @pl.when(layer == 0)
    def _init():
        h_sc[...] = h0_ref[...]
        c_sc[...] = c0_ref[...]
        g_sc[...] = jnp.mean(h0_ref[...], axis=1)
        cg_sc[...] = jnp.mean(c0_ref[...], axis=1)

    mask3 = mask_ref[...]                 # (1, S, H), lane-dense seq mask
    h = h_sc[...] * mask3                 # masked hidden states (1, S, H)
    c = c_sc[...] * mask3
    g = g_sc[...]                         # (1, H)
    cg = cg_sc[...]                       # (1, H)

    # get_hidden_before / get_hidden_after: XLU sublane roll + boundary zeroing
    sidx = jax.lax.broadcasted_iota(jnp.int32, (1, Sk, H), 1)
    not_first = (sidx > 0).astype(F32)
    not_last = (sidx < Sk - 1).astype(F32)
    h_before = pltpu.roll(h, 1, 1) * not_first
    h_after = pltpu.roll(h, Sk - 1, 1) * not_last
    c_before = pltpu.roll(c, 1, 1) * not_first
    c_after = pltpu.roll(c, Sk - 1, 1) * not_last

    # ---- one fused seq-path matmul: (S, 3H+E) @ (3H+E, 8H)
    # columns [0:7H]  = SCell gates i,l,r,f,s,o,u
    # columns [7H:8H] = GCell u(h) contribution to f_w
    x_cat = jnp.concatenate([h_before, h, h_after, x_ref[...]], axis=-1)
    x2 = x_cat.reshape(Sk, x_cat.shape[-1])
    seq_out = jnp.dot(x2, wseq_ref[...],
                      preferred_element_type=F32).reshape(1, Sk, 8 * H)

    # ---- fused g-path matmuls
    # gpath columns [0:7H]=V(g)+b, [7H:8H]=w(g)+u_b, [8H:9H]=W_f(g)+U_b_f, [9H:10H]=W_o(g)+U_b_o
    gpath = jnp.dot(g, wg_ref[...], preferred_element_type=F32) + bg_ref[...]   # (1, 10H)
    h_avg = jnp.mean(h, axis=1)                                                 # (1, H)
    fo = jnp.dot(h_avg, uavg_ref[...], preferred_element_type=F32)              # (1, 2H)

    gates = seq_out + gpath[:, None, :8 * H]                                    # (1, S, 8H)

    # ----------------------------- SCell -----------------------------
    sig = jax.nn.sigmoid(gates)            # lane-dense; o/u columns unused
    es = jnp.exp(sig[..., :5 * H])         # exp(sigmoid) of i,l,r,f,s
    e_i = es[..., 0:H]
    e_l = es[..., H:2 * H]
    e_r = es[..., 2 * H:3 * H]
    e_f = es[..., 3 * H:4 * H]
    e_s = es[..., 4 * H:5 * H]
    inv = pl.reciprocal(e_i + e_l + e_r + e_f + e_s, approx=True)  # 5-gate softmax denom

    o_g = gates[..., 5 * H:6 * H]          # o gate NOT squashed (matches PyTorch source)
    u = jnp.tanh(gates[..., 6 * H:7 * H])

    new_c = (c_before * e_l + c * e_f + c_after * e_r
             + cg[:, None, :] * e_s + u * e_i) * inv
    new_h = o_g * jnp.tanh(new_c)

    # -------------------- GCell (uses pre-update h, c, g, cg) --------------------
    fo_s = jax.nn.sigmoid(gpath[:, 8 * H:] + fo)     # (1, 2H)
    f_gc = fo_s[:, :H]
    o_gc = fo_s[:, H:]

    f_w = sig[..., 7 * H:8 * H] - (1.0 - mask3) * 1e16          # (1, S, H)
    m = jnp.max(f_w, axis=1, keepdims=True)
    e = jnp.exp(f_w - m)
    f_w = e * pl.reciprocal(jnp.sum(e, axis=1, keepdims=True), approx=True)

    new_cg = f_gc * cg + jnp.sum(c * f_w, axis=1)
    new_g = o_gc * jnp.tanh(new_cg)

    # state update for the next layer
    h_sc[...] = new_h
    c_sc[...] = new_c
    g_sc[...] = new_g
    cg_sc[...] = new_cg

    # ---- last layer: per-batch output projection w_out(g)
    @pl.when(layer == pl.num_programs(1) - 1)
    def _finalize():
        logits = (jnp.dot(new_g, wout_ref[...], preferred_element_type=F32)
                  + woutb_ref[...])
        logits_ref[...] = logits[:, None, :]


def init_params(key):
    ks = jax.random.split(key, 16)

    def w(k, shape, scale=0.2):
        return scale * jax.random.normal(k, shape, dtype=F32)

    return {
        "embedding": w(ks[0], (VOCAB, EMB)),
        "emb_proj_w": w(ks[1], (EMB, HID)),
        "emb_proj_b": w(ks[2], (1, HID)),
        # SCell: W (3H->7H, no bias), U (E->7H, no bias), V (H->7H, bias)
        "s_W": w(ks[3], (7, 3, HID, HID)),
        "s_U": w(ks[4], (7, EMB, HID)),
        "s_V": w(ks[5], (7, HID, HID)),
        "s_V_b": w(ks[6], (7, 1, HID)),
        # GCell: W (H->2H, no bias), U (H->2H, bias), w (H->H, no bias), u (H->H, bias)
        "g_W": w(ks[7], (2, HID, HID)),
        "g_U": w(ks[8], (2, HID, HID)),
        "g_U_b": w(ks[9], (2, 1, HID)),
        "g_w": w(ks[10], (HID, HID)),
        "g_u": w(ks[11], (HID, HID)),
        "g_u_b": w(ks[12], (1, HID)),
        # output head
        "w_out": w(ks[13], (HID, LABEL)),
        "w_out_b": w(ks[14], (1, LABEL)),
    }


def _fuse_weights(p):
    """Prefuse the per-gate weights into wide MXU-friendly matrices."""
    H, E = HID, EMB
    # seq-path: rows [h_before | h | h_after | x], cols [7 SCell gates | GCell u(h)]
    w7 = jnp.concatenate([p["s_W"][:, 0], p["s_W"][:, 1], p["s_W"][:, 2], p["s_U"]],
                         axis=1)                                   # (7, 3H+E, H)
    w7 = jnp.transpose(w7, (1, 0, 2)).reshape(3 * H + E, 7 * H)    # (3H+E, 7H)
    col_u = jnp.concatenate([jnp.zeros((H, H), F32), p["g_u"],
                             jnp.zeros((H, H), F32), jnp.zeros((E, H), F32)], axis=0)
    w_seq = jnp.concatenate([w7, col_u], axis=1)                   # (3H+E, 8H)

    # g-path: cols [7 SCell V gates | GCell w | GCell W_f | GCell W_o]
    v7 = jnp.transpose(p["s_V"], (1, 0, 2)).reshape(H, 7 * H)
    w_g = jnp.concatenate([v7, p["g_w"], p["g_W"][0], p["g_W"][1]], axis=1)   # (H, 10H)
    b_g = jnp.concatenate([p["s_V_b"].reshape(1, 7 * H),
                           p["g_u_b"].reshape(1, H),
                           p["g_U_b"][0].reshape(1, H),
                           p["g_U_b"][1].reshape(1, H)], axis=1)              # (1, 10H)
    u_avg = jnp.concatenate([p["g_U"][0], p["g_U"][1]], axis=1)               # (H, 2H)
    return w_seq, w_g, b_g, u_avg


@jax.jit
def slstm_forward(params, node_text, word_mask):
    """Equivalent of SLSTM.forward(...)[0:2]; only node_text / word_mask are used."""
    # --- glue (plain JAX): embedding gather + input projection ---
    emb = params["embedding"][node_text]                          # (B, S, EMB)
    maskf = word_mask.astype(F32)                                 # (B, S)
    mask3 = jnp.broadcast_to(maskf[:, :, None], (B, S, HID))      # lane-dense mask
    proj = emb @ params["emb_proj_w"] + params["emb_proj_b"]      # (B, S, HID)
    # TODO(synk): nn.Dropout is treated as identity (eval mode); training-mode RNG dropout not implemented.
    h0 = proj * maskf[:, :, None]
    c0 = proj * maskf[:, :, None]

    w_seq, w_g, b_g, u_avg = _fuse_weights(params)

    def batched(shape):
        nd = len(shape)
        return pl.BlockSpec((1,) + tuple(shape[1:]),
                            lambda b, l, nd=nd: (b,) + (0,) * (nd - 1))

    def full(shape):
        nd = len(shape)
        return pl.BlockSpec(tuple(shape), lambda b, l, nd=nd: (0,) * nd)

    inputs = (emb, mask3, h0, c0, w_seq, w_g, b_g, u_avg,
              params["w_out"], params["w_out_b"])
    in_specs = [batched(emb.shape), batched(mask3.shape),
                batched(h0.shape), batched(c0.shape),
                full(w_seq.shape), full(w_g.shape), full(b_g.shape),
                full(u_avg.shape), full(params["w_out"].shape),
                full(params["w_out_b"].shape)]

    logits3 = pl.pallas_call(
        slstm_kernel,
        out_shape=jax.ShapeDtypeStruct((B, 1, LABEL), F32),
        grid=(B, NUM_LAYERS),
        in_specs=in_specs,
        out_specs=pl.BlockSpec((1, 1, LABEL), lambda b, l: (b, 0, 0)),
        scratch_shapes=[pltpu.VMEM((1, S, HID), F32),   # h state
                        pltpu.VMEM((1, S, HID), F32),   # c state
                        pltpu.VMEM((1, HID), F32),      # g
                        pltpu.VMEM((1, HID), F32)],     # c_g
        compiler_params=pltpu.CompilerParams(
            dimension_semantics=("parallel", "arbitrary")),
    )(*inputs)

    logits = logits3[:, 0, :]
    # w_out is linear, so w_out(mean(g, 0)) == mean over batch of per-batch logits.
    logits_mean = jnp.mean(logits, axis=0)
    return logits, logits_mean


def ref_forward(params, node_text, word_mask):
    """Pure-JAX reference mirroring the PyTorch code (eval mode), high precision."""
    with jax.default_matmul_precision("highest"):
        emb = params["embedding"][node_text]
        mask3 = word_mask.astype(F32)[:, :, None]
        proj = emb @ params["emb_proj_w"] + params["emb_proj_b"]
        h = proj * mask3
        c = proj * mask3
        g = jnp.mean(h, axis=1)
        cg = jnp.mean(c, axis=1)
        zrow = jnp.zeros((B, 1, HID), F32)
        for _ in range(NUM_LAYERS):
            h = h * mask3
            c = c * mask3
            hb = jnp.concatenate([zrow, h[:, :-1]], axis=1)
            ha = jnp.concatenate([h[:, 1:], zrow], axis=1)
            cb = jnp.concatenate([zrow, c[:, :-1]], axis=1)
            ca = jnp.concatenate([c[:, 1:], zrow], axis=1)
            gates = []
            for k in range(7):
                gk = (hb @ params["s_W"][k, 0] + h @ params["s_W"][k, 1]
                      + ha @ params["s_W"][k, 2] + emb @ params["s_U"][k]
                      + (g @ params["s_V"][k] + params["s_V_b"][k])[:, None, :])
                gates.append(gk)
            i_g, l_g, r_g, f_g, s_g, o_g, u_g = gates
            u = jnp.tanh(u_g)
            stacked = jax.nn.sigmoid(jnp.stack([i_g, l_g, r_g, f_g, s_g], axis=-2))
            sm = jax.nn.softmax(stacked, axis=-2)
            i_n, l_n, r_n, f_n, s_n = [sm[..., j, :] for j in range(5)]
            new_c = cb * l_n + c * f_n + r_n * ca + s_n * cg[:, None, :] + i_n * u
            new_h = o_g * jnp.tanh(new_c)

            h_avg = jnp.mean(h, axis=1)
            f_gc = jax.nn.sigmoid(g @ params["g_W"][0] + h_avg @ params["g_U"][0]
                                  + params["g_U_b"][0])
            o_gc = jax.nn.sigmoid(g @ params["g_W"][1] + h_avg @ params["g_U"][1]
                                  + params["g_U_b"][1])
            f_w = (jax.nn.sigmoid((g @ params["g_w"])[:, None, :] + h @ params["g_u"]
                                  + params["g_u_b"])
                   - (1.0 - mask3) * 1e16)
            f_w = jax.nn.softmax(f_w, axis=1)
            new_cg = f_gc * cg + jnp.sum(c * f_w, axis=1)
            new_g = o_gc * jnp.tanh(new_cg)
            h, c, g, cg = new_h, new_c, new_g, new_cg
        logits = g @ params["w_out"] + params["w_out_b"]
        logits_mean = jnp.mean(g, axis=0) @ params["w_out"] + params["w_out_b"][0]
        return logits, logits_mean


if __name__ == "__main__":
    key = jax.random.PRNGKey(0)
    kp, kt = jax.random.split(key)
    params = init_params(kp)

    node_text = jax.random.randint(kt, (B, S), 0, VOCAB, dtype=jnp.int32)
    lengths = jnp.array([S, 5], dtype=jnp.int32)
    word_mask = (jnp.arange(S)[None, :] < lengths[:, None]).astype(jnp.int32)

    logits, logits_mean = jax.block_until_ready(
        slstm_forward(params, node_text, word_mask))

    ref_logits, ref_logits_mean = ref_forward(params, node_text, word_mask)
    # Kernel uses default MXU precision (bf16 passes) + approx reciprocals,
    # reference runs at 'highest' f32; 2e-2 covers that gap comfortably.
    np.testing.assert_allclose(np.asarray(logits), np.asarray(ref_logits),
                               rtol=2e-2, atol=2e-2)
    np.testing.assert_allclose(np.asarray(logits_mean), np.asarray(ref_logits_mean),
                               rtol=2e-2, atol=2e-2)

    print("KERNEL_OK")
</pallas_src>

<mosaic_0001>
module attributes {stable_mosaic.version = 11 : i64} {
  func.func @slstm_kernel(%arg0: i32, %arg1: i32, %arg2: memref<1x8x16xf32, #tpu.memory_space<vmem>>, %arg3: memref<1x8x32xf32, #tpu.memory_space<vmem>>, %arg4: memref<1x8x32xf32, #tpu.memory_space<vmem>>, %arg5: memref<1x8x32xf32, #tpu.memory_space<vmem>>, %arg6: memref<112x256xf32, #tpu.memory_space<vmem>>, %arg7: memref<32x320xf32, #tpu.memory_space<vmem>>, %arg8: memref<1x320xf32, #tpu.memory_space<vmem>>, %arg9: memref<32x64xf32, #tpu.memory_space<vmem>>, %arg10: memref<32x4xf32, #tpu.memory_space<vmem>>, %arg11: memref<1x4xf32, #tpu.memory_space<vmem>>, %arg12: memref<1x1x4xf32, #tpu.memory_space<vmem>>, %arg13: memref<1x8x32xf32, #tpu.memory_space<vmem>>, %arg14: memref<1x8x32xf32, #tpu.memory_space<vmem>>, %arg15: memref<1x32xf32, #tpu.memory_space<vmem>>, %arg16: memref<1x32xf32, #tpu.memory_space<vmem>>) attributes {dimension_semantics = [#tpu.dimension_semantics<parallel>, #tpu.dimension_semantics<arbitrary>], iteration_bounds = array<i64: 2, 2>, scalar_prefetch = 0 : i64, scratch_operands = 4 : i64, tpu.core_type = #tpu.core_type<tc>, window_params = [{transform_indices = @transform_0, window_bounds = array<i64: 1, 8, 16>}, {transform_indices = @transform_1, window_bounds = array<i64: 1, 8, 32>}, {transform_indices = @transform_2, window_bounds = array<i64: 1, 8, 32>}, {transform_indices = @transform_3, window_bounds = array<i64: 1, 8, 32>}, {pipeline_mode = #tpu.pipeline_mode<synchronous>, transform_indices = @transform_4, window_bounds = array<i64: 112, 256>}, {pipeline_mode = #tpu.pipeline_mode<synchronous>, transform_indices = @transform_5, window_bounds = array<i64: 32, 320>}, {pipeline_mode = #tpu.pipeline_mode<synchronous>, transform_indices = @transform_6, window_bounds = array<i64: 1, 320>}, {pipeline_mode = #tpu.pipeline_mode<synchronous>, transform_indices = @transform_7, window_bounds = array<i64: 32, 64>}, {pipeline_mode = #tpu.pipeline_mode<synchronous>, transform_indices = @transform_8, window_bounds = array<i64: 32, 4>}, {pipeline_mode = #tpu.pipeline_mode<synchronous>, transform_indices = @transform_9, window_bounds = array<i64: 1, 4>}, {transform_indices = @transform_10, window_bounds = array<i64: 1, 1, 4>}]} {
    %c0_i32 = arith.constant 0 : i32
    %0 = arith.cmpi eq, %arg1, %c0_i32 : i32
    %1 = arith.extui %0 : i1 to i32
    %c0_i32_0 = arith.constant 0 : i32
    %2 = arith.cmpi ne, %1, %c0_i32_0 : i32
    scf.if %2 {
      %c0_51 = arith.constant 0 : index
      %c0_52 = arith.constant 0 : index
      %c0_53 = arith.constant 0 : index
      %118 = vector.load %arg4[%c0_51, %c0_52, %c0_53] : memref<1x8x32xf32, #tpu.memory_space<vmem>>, vector<1x8x32xf32>
      %c0_54 = arith.constant 0 : index
      %c0_55 = arith.constant 0 : index
      %c0_56 = arith.constant 0 : index
      %119 = vector.load %arg13[%c0_54, %c0_55, %c0_56] : memref<1x8x32xf32, #tpu.memory_space<vmem>>, vector<1x8x32xf32>
      tpu.vector_store %arg13[%c0_54, %c0_55, %c0_56], %118 {strides = array<i32>} : memref<1x8x32xf32, #tpu.memory_space<vmem>>, vector<1x8x32xf32>,
      %c0_57 = arith.constant 0 : index
      %c0_58 = arith.constant 0 : index
      %c0_59 = arith.constant 0 : index
      %120 = vector.load %arg5[%c0_57, %c0_58, %c0_59] : memref<1x8x32xf32, #tpu.memory_space<vmem>>, vector<1x8x32xf32>
      %c0_60 = arith.constant 0 : index
      %c0_61 = arith.constant 0 : index
      %c0_62 = arith.constant 0 : index
      %121 = vector.load %arg14[%c0_60, %c0_61, %c0_62] : memref<1x8x32xf32, #tpu.memory_space<vmem>>, vector<1x8x32xf32>
      tpu.vector_store %arg14[%c0_60, %c0_61, %c0_62], %120 {strides = array<i32>} : memref<1x8x32xf32, #tpu.memory_space<vmem>>, vector<1x8x32xf32>,
      %c0_63 = arith.constant 0 : index
      %c0_64 = arith.constant 0 : index
      %c0_65 = arith.constant 0 : index
      %122 = vector.load %arg4[%c0_63, %c0_64, %c0_65] : memref<1x8x32xf32, #tpu.memory_space<vmem>>, vector<1x8x32xf32>
      %cst_66 = arith.constant dense<0.000000e+00> : vector<1x32xf32>
      %123 = vector.multi_reduction <add>, %122, %cst_66 [1] : vector<1x8x32xf32> to vector<1x32xf32>
      %cst_67 = arith.constant 8.000000e+00 : f32
      %124 = vector.broadcast %cst_67 : f32 to vector<1x32xf32>
      %125 = arith.divf %123, %124 : vector<1x32xf32>
      %c0_68 = arith.constant 0 : index
      %c0_69 = arith.constant 0 : index
      %126 = vector.load %arg15[%c0_68, %c0_69] : memref<1x32xf32, #tpu.memory_space<vmem>>, vector<1x32xf32>
      tpu.vector_store %arg15[%c0_68, %c0_69], %125 {strides = array<i32>} : memref<1x32xf32, #tpu.memory_space<vmem>>, vector<1x32xf32>,
      %c0_70 = arith.constant 0 : index
      %c0_71 = arith.constant 0 : index
      %c0_72 = arith.constant 0 : index
      %127 = vector.load %arg5[%c0_70, %c0_71, %c0_72] : memref<1x8x32xf32, #tpu.memory_space<vmem>>, vector<1x8x32xf32>
      %cst_73 = arith.constant dense<0.000000e+00> : vector<1x32xf32>
      %128 = vector.multi_reduction <add>, %127, %cst_73 [1] : vector<1x8x32xf32> to vector<1x32xf32>
      %cst_74 = arith.constant 8.000000e+00 : f32
      %129 = vector.broadcast %cst_74 : f32 to vector<1x32xf32>
      %130 = arith.divf %128, %129 : vector<1x32xf32>
      %c0_75 = arith.constant 0 : index
      %c0_76 = arith.constant 0 : index
      %131 = vector.load %arg16[%c0_75, %c0_76] : memref<1x32xf32, #tpu.memory_space<vmem>>, vector<1x32xf32>
      tpu.vector_store %arg16[%c0_75, %c0_76], %130 {strides = array<i32>} : memref<1x32xf32, #tpu.memory_space<vmem>>, vector<1x32xf32>,
    } else {
    }
    %c0 = arith.constant 0 : index
    %c0_1 = arith.constant 0 : index
    %c0_2 = arith.constant 0 : index
    %3 = vector.load %arg3[%c0, %c0_1, %c0_2] : memref<1x8x32xf32, #tpu.memory_space<vmem>>, vector<1x8x32xf32>
    %c0_3 = arith.constant 0 : index
    %c0_4 = arith.constant 0 : index
    %c0_5 = arith.constant 0 : index
    %4 = vector.load %arg13[%c0_3, %c0_4, %c0_5] : memref<1x8x32xf32, #tpu.memory_space<vmem>>, vector<1x8x32xf32>
    %5 = arith.mulf %4, %3 : vector<1x8x32xf32>
    %c0_6 = arith.constant 0 : index
    %c0_7 = arith.constant 0 : index
    %c0_8 = arith.constant 0 : index
    %6 = vector.load %arg14[%c0_6, %c0_7, %c0_8] : memref<1x8x32xf32, #tpu.memory_space<vmem>>, vector<1x8x32xf32>
    %7 = arith.mulf %6, %3 : vector<1x8x32xf32>
    %c0_9 = arith.constant 0 : index
    %c0_10 = arith.constant 0 : index
    %8 = vector.load %arg15[%c0_9, %c0_10] : memref<1x32xf32, #tpu.memory_space<vmem>>, vector<1x32xf32>
    %c0_11 = arith.constant 0 : index
    %c0_12 = arith.constant 0 : index
    %9 = vector.load %arg16[%c0_11, %c0_12] : memref<1x32xf32, #tpu.memory_space<vmem>>, vector<1x32xf32>
    %10 = tpu.iota {dimensions = array<i32: 1>} : vector<1x8x32xi32>
    %c0_i32_13 = arith.constant 0 : i32
    %11 = vector.broadcast %c0_i32_13 : i32 to vector<1x8x32xi32>
    %12 = arith.cmpi sgt, %10, %11 : vector<1x8x32xi32>
    %13 = arith.extui %12 : vector<1x8x32xi1> to vector<1x8x32xi32>
    %14 = arith.sitofp %13 : vector<1x8x32xi32> to vector<1x8x32xf32>
    %c7_i32 = arith.constant 7 : i32
    %15 = vector.broadcast %c7_i32 : i32 to vector<1x8x32xi32>
    %16 = arith.cmpi slt, %10, %15 : vector<1x8x32xi32>
    %17 = arith.extui %16 : vector<1x8x32xi1> to vector<1x8x32xi32>
    %18 = arith.sitofp %17 : vector<1x8x32xi32> to vector<1x8x32xf32>
    %c1_i32 = arith.constant 1 : i32
    %19 = tpu.dynamic_rotate %5 by %c1_i32 dim 1 : vector<1x8x32xf32>, i32 -> vector<1x8x32xf32>
    %20 = arith.mulf %19, %14 : vector<1x8x32xf32>
    %c7_i32_14 = arith.constant 7 : i32
    %21 = tpu.dynamic_rotate %5 by %c7_i32_14 dim 1 : vector<1x8x32xf32>, i32 -> vector<1x8x32xf32>
    %22 = arith.mulf %21, %18 : vector<1x8x32xf32>
    %c1_i32_15 = arith.constant 1 : i32
    %23 = tpu.dynamic_rotate %7 by %c1_i32_15 dim 1 : vector<1x8x32xf32>, i32 -> vector<1x8x32xf32>
    %24 = arith.mulf %23, %14 : vector<1x8x32xf32>
    %c7_i32_16 = arith.constant 7 : i32
    %25 = tpu.dynamic_rotate %7 by %c7_i32_16 dim 1 : vector<1x8x32xf32>, i32 -> vector<1x8x32xf32>
    %26 = arith.mulf %25, %18 : vector<1x8x32xf32>
    %c0_17 = arith.constant 0 : index
    %c0_18 = arith.constant 0 : index
    %c0_19 = arith.constant 0 : index
    %27 = vector.load %arg2[%c0_17, %c0_18, %c0_19] : memref<1x8x16xf32, #tpu.memory_space<vmem>>, vector<1x8x16xf32>
    %28 = tpu.concatenate %20, %5, %22, %27 in 2 : vector<1x8x32xf32>, vector<1x8x32xf32>, vector<1x8x32xf32>, vector<1x8x16xf32> -> vector<1x8x112xf32>
    %29 = vector.shape_cast %28 : vector<1x8x112xf32> to vector<8x112xf32>
    %c0_20 = arith.constant 0 : index
    %c0_21 = arith.constant 0 : index
    %30 = vector.load %arg6[%c0_20, %c0_21] : memref<112x256xf32, #tpu.memory_space<vmem>>, vector<112x256xf32>
    %cst = arith.constant dense<0.000000e+00> : vector<8x256xf32>
    %31 = tpu.matmul %29, %30, %cst {dimension_numbers = #tpu.dot_dimension_numbers<[1], [0], [0], [1], [0, 0, 1, 1], [], []>} : vector<8x112xf32>, vector<112x256xf32>, vector<8x256xf32> -> vector<8x256xf32>
    %32 = vector.shape_cast %31 : vector<8x256xf32> to vector<1x8x256xf32>
    %c0_22 = arith.constant 0 : index
    %c0_23 = arith.constant 0 : index
    %33 = vector.load %arg7[%c0_22, %c0_23] : memref<32x320xf32, #tpu.memory_space<vmem>>, vector<32x320xf32>
    %cst_24 = arith.constant dense<0.000000e+00> : vector<1x320xf32>
    %34 = tpu.matmul %8, %33, %cst_24 {dimension_numbers = #tpu.dot_dimension_numbers<[1], [0], [0], [1], [0, 0, 1, 1], [], []>} : vector<1x32xf32>, vector<32x320xf32>, vector<1x320xf32> -> vector<1x320xf32>
    %c0_25 = arith.constant 0 : index
    %c0_26 = arith.constant 0 : index
    %35 = vector.load %arg8[%c0_25, %c0_26] : memref<1x320xf32, #tpu.memory_space<vmem>>, vector<1x320xf32>
    %36 = arith.addf %34, %35 : vector<1x320xf32>
    %cst_27 = arith.constant dense<0.000000e+00> : vector<1x32xf32>
    %37 = vector.multi_reduction <add>, %5, %cst_27 [1] : vector<1x8x32xf32> to vector<1x32xf32>
    %cst_28 = arith.constant 8.000000e+00 : f32
    %38 = vector.broadcast %cst_28 : f32 to vector<1x32xf32>
    %39 = arith.divf %37, %38 : vector<1x32xf32>
    %c0_29 = arith.constant 0 : index
    %c0_30 = arith.constant 0 : index
    %40 = vector.load %arg9[%c0_29, %c0_30] : memref<32x64xf32, #tpu.memory_space<vmem>>, vector<32x64xf32>
    %cst_31 = arith.constant dense<0.000000e+00> : vector<1x64xf32>
    %41 = tpu.matmul %39, %40, %cst_31 {dimension_numbers = #tpu.dot_dimension_numbers<[1], [0], [0], [1], [0, 0, 1, 1], [], []>} : vector<1x32xf32>, vector<32x64xf32>, vector<1x64xf32> -> vector<1x64xf32>
    %42 = vector.extract_strided_slice %36 {offsets = [0, 0], sizes = [1, 256], strides = [1, 1]} : vector<1x320xf32> to vector<1x256xf32>
    %43 = vector.shape_cast %42 : vector<1x256xf32> to vector<1x1x256xf32>
    %44 = vector.broadcast %43 : vector<1x1x256xf32> to vector<1x8x256xf32>
    %45 = arith.addf %32, %44 : vector<1x8x256xf32>
    %46 = arith.negf %45 : vector<1x8x256xf32>
    %47 = math.exp %46 : vector<1x8x256xf32>
    %cst_32 = arith.constant 1.000000e+00 : f32
    %48 = vector.broadcast %cst_32 : f32 to vector<1x8x256xf32>
    %49 = arith.addf %48, %47 : vector<1x8x256xf32>
    %50 = arith.divf %48, %49 : vector<1x8x256xf32>
    %51 = vector.extract_strided_slice %50 {offsets = [0, 0, 0], sizes = [1, 8, 160], strides = [1, 1, 1]} : vector<1x8x256xf32> to vector<1x8x160xf32>
    %52 = math.exp %51 : vector<1x8x160xf32>
    %53 = vector.extract_strided_slice %52 {offsets = [0, 0, 0], sizes = [1, 8, 32], strides = [1, 1, 1]} : vector<1x8x160xf32> to vector<1x8x32xf32>
    %54 = vector.extract_strided_slice %52 {offsets = [0, 0, 32], sizes = [1, 8, 32], strides = [1, 1, 1]} : vector<1x8x160xf32> to vector<1x8x32xf32>
    %55 = vector.extract_strided_slice %52 {offsets = [0, 0, 64], sizes = [1, 8, 32], strides = [1, 1, 1]} : vector<1x8x160xf32> to vector<1x8x32xf32>
    %56 = vector.extract_strided_slice %52 {offsets = [0, 0, 96], sizes = [1, 8, 32], strides = [1, 1, 1]} : vector<1x8x160xf32> to vector<1x8x32xf32>
    %57 = vector.extract_strided_slice %52 {offsets = [0, 0, 128], sizes = [1, 8, 32], strides = [1, 1, 1]} : vector<1x8x160xf32> to vector<1x8x32xf32>
    %58 = arith.addf %53, %54 : vector<1x8x32xf32>
    %59 = arith.addf %58, %55 : vector<1x8x32xf32>
    %60 = arith.addf %59, %56 : vector<1x8x32xf32>
    %61 = arith.addf %60, %57 : vector<1x8x32xf32>
    %62 = tpu.reciprocal %61 {approx = true} : vector<1x8x32xf32> -> vector<1x8x32xf32>
    %63 = vector.extract_strided_slice %45 {offsets = [0, 0, 160], sizes = [1, 8, 32], strides = [1, 1, 1]} : vector<1x8x256xf32> to vector<1x8x32xf32>
    %64 = vector.extract_strided_slice %45 {offsets = [0, 0, 192], sizes = [1, 8, 32], strides = [1, 1, 1]} : vector<1x8x256xf32> to vector<1x8x32xf32>
    %65 = math.tanh %64 : vector<1x8x32xf32>
    %66 = arith.mulf %24, %54 : vector<1x8x32xf32>
    %67 = arith.mulf %7, %56 : vector<1x8x32xf32>
    %68 = arith.addf %66, %67 : vector<1x8x32xf32>
    %69 = arith.mulf %26, %55 : vector<1x8x32xf32>
    %70 = arith.addf %68, %69 : vector<1x8x32xf32>
    %71 = vector.shape_cast %9 : vector<1x32xf32> to vector<1x1x32xf32>
    %72 = vector.broadcast %71 : vector<1x1x32xf32> to vector<1x8x32xf32>
    %73 = arith.mulf %72, %57 : vector<1x8x32xf32>
    %74 = arith.addf %70, %73 : vector<1x8x32xf32>
    %75 = arith.mulf %65, %53 : vector<1x8x32xf32>
    %76 = arith.addf %74, %75 : vector<1x8x32xf32>
    %77 = arith.mulf %76, %62 : vector<1x8x32xf32>
    %78 = math.tanh %77 : vector<1x8x32xf32>
    %79 = arith.mulf %63, %78 : vector<1x8x32xf32>
    %80 = vector.extract_strided_slice %36 {offsets = [0, 256], sizes = [1, 64], strides = [1, 1]} : vector<1x320xf32> to vector<1x64xf32>
    %81 = arith.addf %80, %41 : vector<1x64xf32>
    %82 = arith.negf %81 : vector<1x64xf32>
    %83 = math.exp %82 : vector<1x64xf32>
    %cst_33 = arith.constant 1.000000e+00 : f32
    %84 = vector.broadcast %cst_33 : f32 to vector<1x64xf32>
    %85 = arith.addf %84, %83 : vector<1x64xf32>
    %86 = arith.divf %84, %85 : vector<1x64xf32>
    %87 = vector.extract_strided_slice %86 {offsets = [0, 0], sizes = [1, 32], strides = [1, 1]} : vector<1x64xf32> to vector<1x32xf32>
    %88 = vector.extract_strided_slice %86 {offsets = [0, 32], sizes = [1, 32], strides = [1, 1]} : vector<1x64xf32> to vector<1x32xf32>
    %89 = vector.extract_strided_slice %50 {offsets = [0, 0, 224], sizes = [1, 8, 32], strides = [1, 1, 1]} : vector<1x8x256xf32> to vector<1x8x32xf32>
    %cst_34 = arith.constant 1.000000e+00 : f32
    %90 = vector.broadcast %cst_34 : f32 to vector<1x8x32xf32>
    %91 = arith.subf %90, %3 : vector<1x8x32xf32>
    %cst_35 = arith.constant 1.000000e+16 : f32
    %92 = vector.broadcast %cst_35 : f32 to vector<1x8x32xf32>
    %93 = arith.mulf %91, %92 : vector<1x8x32xf32>
    %94 = arith.subf %89, %93 : vector<1x8x32xf32>
    %cst_36 = arith.constant dense<0xFF800000> : vector<1x32xf32>
    %95 = vector.multi_reduction <maximumf>, %94, %cst_36 [1] : vector<1x8x32xf32> to vector<1x32xf32>
    %96 = vector.shape_cast %95 : vector<1x32xf32> to vector<1x1x32xf32>
    %97 = vector.broadcast %96 : vector<1x1x32xf32> to vector<1x8x32xf32>
    %98 = arith.subf %94, %97 : vector<1x8x32xf32>
    %99 = math.exp %98 : vector<1x8x32xf32>
    %cst_37 = arith.constant dense<0.000000e+00> : vector<1x32xf32>
    %100 = vector.multi_reduction <add>, %99, %cst_37 [1] : vector<1x8x32xf32> to vector<1x32xf32>
    %101 = vector.shape_cast %100 : vector<1x32xf32> to vector<1x1x32xf32>
    %102 = tpu.reciprocal %101 {approx = true} : vector<1x1x32xf32> -> vector<1x1x32xf32>
    %103 = vector.broadcast %102 : vector<1x1x32xf32> to vector<1x8x32xf32>
    %104 = arith.mulf %99, %103 : vector<1x8x32xf32>
    %105 = arith.mulf %87, %9 : vector<1x32xf32>
    %106 = arith.mulf %7, %104 : vector<1x8x32xf32>
    %cst_38 = arith.constant dense<0.000000e+00> : vector<1x32xf32>
    %107 = vector.multi_reduction <add>, %106, %cst_38 [1] : vector<1x8x32xf32> to vector<1x32xf32>
    %108 = arith.addf %105, %107 : vector<1x32xf32>
    %109 = math.tanh %108 : vector<1x32xf32>
    %110 = arith.mulf %88, %109 : vector<1x32xf32>
    %c0_39 = arith.constant 0 : index
    %c0_40 = arith.constant 0 : index
    %c0_41 = arith.constant 0 : index
    %111 = vector.load %arg13[%c0_39, %c0_40, %c0_41] : memref<1x8x32xf32, #tpu.memory_space<vmem>>, vector<1x8x32xf32>
    tpu.vector_store %arg13[%c0_39, %c0_40, %c0_41], %79 {strides = array<i32>} : memref<1x8x32xf32, #tpu.memory_space<vmem>>, vector<1x8x32xf32>,
    %c0_42 = arith.constant 0 : index
    %c0_43 = arith.constant 0 : index
    %c0_44 = arith.constant 0 : index
    %112 = vector.load %arg14[%c0_42, %c0_43, %c0_44] : memref<1x8x32xf32, #tpu.memory_space<vmem>>, vector<1x8x32xf32>
    tpu.vector_store %arg14[%c0_42, %c0_43, %c0_44], %77 {strides = array<i32>} : memref<1x8x32xf32, #tpu.memory_space<vmem>>, vector<1x8x32xf32>,
    %c0_45 = arith.constant 0 : index
    %c0_46 = arith.constant 0 : index
    %113 = vector.load %arg15[%c0_45, %c0_46] : memref<1x32xf32, #tpu.memory_space<vmem>>, vector<1x32xf32>
    tpu.vector_store %arg15[%c0_45, %c0_46], %110 {strides = array<i32>} : memref<1x32xf32, #tpu.memory_space<vmem>>, vector<1x32xf32>,
    %c0_47 = arith.constant 0 : index
    %c0_48 = arith.constant 0 : index
    %114 = vector.load %arg16[%c0_47, %c0_48] : memref<1x32xf32, #tpu.memory_space<vmem>>, vector<1x32xf32>
    tpu.vector_store %arg16[%c0_47, %c0_48], %108 {strides = array<i32>} : memref<1x32xf32, #tpu.memory_space<vmem>>, vector<1x32xf32>,
    %c1_i32_49 = arith.constant 1 : i32
    %115 = arith.cmpi eq, %arg1, %c1_i32_49 : i32
    %116 = arith.extui %115 : i1 to i32
    %c0_i32_50 = arith.constant 0 : i32
    %117 = arith.cmpi ne, %116, %c0_i32_50 : i32
    scf.if %117 {
      %c0_51 = arith.constant 0 : index
      %c0_52 = arith.constant 0 : index
      %118 = vector.load %arg10[%c0_51, %c0_52] : memref<32x4xf32, #tpu.memory_space<vmem>>, vector<32x4xf32>
      %cst_53 = arith.constant dense<0.000000e+00> : vector<1x4xf32>
      %119 = tpu.matmul %110, %118, %cst_53 {dimension_numbers = #tpu.dot_dimension_numbers<[1], [0], [0], [1], [0, 0, 1, 1], [], []>} : vector<1x32xf32>, vector<32x4xf32>, vector<1x4xf32> -> vector<1x4xf32>
      %c0_54 = arith.constant 0 : index
      %c0_55 = arith.constant 0 : index
      %120 = vector.load %arg11[%c0_54, %c0_55] : memref<1x4xf32, #tpu.memory_space<vmem>>, vector<1x4xf32>
      %121 = arith.addf %119, %120 : vector<1x4xf32>
      %122 = vector.shape_cast %121 : vector<1x4xf32> to vector<1x1x4xf32>
      %c0_56 = arith.constant 0 : index
      %c0_57 = arith.constant 0 : index
      %c0_58 = arith.constant 0 : index
      %123 = vector.load %arg12[%c0_56, %c0_57, %c0_58] : memref<1x1x4xf32, #tpu.memory_space<vmem>>, vector<1x1x4xf32>
      tpu.vector_store %arg12[%c0_56, %c0_57, %c0_58], %122 {strides = array<i32>} : memref<1x1x4xf32, #tpu.memory_space<vmem>>, vector<1x1x4xf32>,
    } else {
    }
    return
  }
  func.func @transform_0(%arg0: i32, %arg1: i32) -> (i32, i32, i32) {
    %c0_i32 = arith.constant 0 : i32
    %c0_i32_0 = arith.constant 0 : i32
    %c0_i32_1 = arith.constant 0 : i32
    return %arg0, %c0_i32, %c0_i32_0 : i32, i32, i32
  }
  func.func @transform_1(%arg0: i32, %arg1: i32) -> (i32, i32, i32) {
    %c0_i32 = arith.constant 0 : i32
    %c0_i32_0 = arith.constant 0 : i32
    %c0_i32_1 = arith.constant 0 : i32
    return %arg0, %c0_i32, %c0_i32_0 : i32, i32, i32
  }
  func.func @transform_2(%arg0: i32, %arg1: i32) -> (i32, i32, i32) {
    %c0_i32 = arith.constant 0 : i32
    %c0_i32_0 = arith.constant 0 : i32
    %c0_i32_1 = arith.constant 0 : i32
    return %arg0, %c0_i32, %c0_i32_0 : i32, i32, i32
  }
  func.func @transform_3(%arg0: i32, %arg1: i32) -> (i32, i32, i32) {
    %c0_i32 = arith.constant 0 : i32
    %c0_i32_0 = arith.constant 0 : i32
    %c0_i32_1 = arith.constant 0 : i32
    return %arg0, %c0_i32, %c0_i32_0 : i32, i32, i32
  }
  func.func @transform_4(%arg0: i32, %arg1: i32) -> (i32, i32) {
    %c0_i32 = arith.constant 0 : i32
    %c0_i32_0 = arith.constant 0 : i32
    %c0_i32_1 = arith.constant 0 : i32
    return %c0_i32, %c0_i32_0 : i32, i32
  }
  func.func @transform_5(%arg0: i32, %arg1: i32) -> (i32, i32) {
    %c0_i32 = arith.constant 0 : i32
    %c0_i32_0 = arith.constant 0 : i32
    %c0_i32_1 = arith.constant 0 : i32
    return %c0_i32, %c0_i32_0 : i32, i32
  }
  func.func @transform_6(%arg0: i32, %arg1: i32) -> (i32, i32) {
    %c0_i32 = arith.constant 0 : i32
    %c0_i32_0 = arith.constant 0 : i32
    %c0_i32_1 = arith.constant 0 : i32
    return %c0_i32, %c0_i32_0 : i32, i32
  }
  func.func @transform_7(%arg0: i32, %arg1: i32) -> (i32, i32) {
    %c0_i32 = arith.constant 0 : i32
    %c0_i32_0 = arith.constant 0 : i32
    %c0_i32_1 = arith.constant 0 : i32
    return %c0_i32, %c0_i32_0 : i32, i32
  }
  func.func @transform_8(%arg0: i32, %arg1: i32) -> (i32, i32) {
    %c0_i32 = arith.constant 0 : i32
    %c0_i32_0 = arith.constant 0 : i32
    %c0_i32_1 = arith.constant 0 : i32
    return %c0_i32, %c0_i32_0 : i32, i32
  }
  func.func @transform_9(%arg0: i32, %arg1: i32) -> (i32, i32) {
    %c0_i32 = arith.constant 0 : i32
    %c0_i32_0 = arith.constant 0 : i32
    %c0_i32_1 = arith.constant 0 : i32
    return %c0_i32, %c0_i32_0 : i32, i32
  }
  func.func @transform_10(%arg0: i32, %arg1: i32) -> (i32, i32, i32) {
    %c0_i32 = arith.constant 0 : i32
    %c0_i32_0 = arith.constant 0 : i32
    %c0_i32_1 = arith.constant 0 : i32
    return %arg0, %c0_i32, %c0_i32_0 : i32, i32, i32
  }
}

</mosaic_0001>

<bundles_post_ra>
// kernel: slstm_forward.1
= control target key start
LH: loop header
LB: loop body
LE: loop exit
PB: predicated region body
PF: predicated region fallthrough
CT: control target
= control target key end

     0   :  { %s1472_s13 = smov 0   ;;  %s1474_s14 = smov 0   ;;  %s1782_s0 = inlined_call_operand.vmem [shape: f32[2,8,16], index: 0, kind: input, shape index: {}]   ;;  %s1783_s1 = inlined_call_operand.vmem [shape: f32[2,8,32], index: 1, kind: input, shape index: {}]   ;;  %s1784_s2 = inlined_call_operand.vmem [shape: f32[2,8,32], index: 2, kind: input, shape index: {}, may-alias: {2,3}]   ;;  %s1785_s3 = inlined_call_operand.vmem [shape: f32[2,8,32], index: 3, kind: input, shape index: {}, may-alias: {2,3}]   ;;  %s1786_s4 = inlined_call_operand.vmem [shape: f32[112,256], index: 4, kind: input, shape index: {}]   ;;  %s1787_s5 = inlined_call_operand.vmem [shape: f32[32,320], index: 5, kind: input, shape index: {}]   ;;  %s1788_s6 = inlined_call_operand.vmem [shape: f32[1,320], index: 6, kind: input, shape index: {}]   ;;  %s1789_s7 = inlined_call_operand.vmem [shape: f32[32,64], index: 7, kind: input, shape index: {}]   ;;  %s1790_s8 = inlined_call_operand.vmem [shape: f32[32,4], index: 8, kind: input, shape index: {}]   ;;  %s1791_s9 = inlined_call_operand.vmem [shape: f32[1,4], index: 9, kind: input, shape index: {}]   ;;  %s1792_s10 = inlined_call_operand.vmem [shape: f32[2,1,4], index: 10, kind: output, shape index: {}]  }
   0x1   :  { %s1476_s15 = smov 0   ;;  %s1478_s16 = smov 0  }
   0x2   :  { %s1480_s17 = smov 0  }
   0x3 LB: > { %s29_s18 = sadd.s32 1, %s1398_s15  ;;  %s32_s19 = sadd.s32 1, %s1402_s16  ;;  %s1406_s17 = sphi %s1480_s17, %s20_s17   ;;  %s1402_s16 = sphi %s1478_s16, %s1800_s16   ;;  %s1398_s15 = sphi %s1476_s15, %s1799_s15   ;;  %s1394_s14 = sphi %s1474_s14, %s1798_s14   ;;  %s1390_s13 = sphi %s1472_s13, %s1797_s13  }
   0x4   : > { %p30_p0 = scmp.ge.s32.totalorder %s29_s18, 2  ;;  %p1167_p1 = scmp.ge.s32.totalorder %s1406_s17, 1 }
   0x5   : > { %p350_p2 = scmp.lt.s32.totalorder %s1406_s17, 5 }
   0x6   : > { %s1802_s18 = smov (%p30_p0, %s29_s18), 0  ;;  %s1804_s19 = smov (!%p30_p0, %s32_s19), %s1402_s16 }
   0x7   : > { %1793 = sst [smem:[#allocation6_spill]] %s1802_s18  ;;  %p351_p3 = pnand %p1167_p1, %p350_p2 }
   0x8   : > { %p34_p4 = scmp.ge.s32.totalorder %s1804_s19, 2  ;;  %p397_p5 = scmp.lt.s32.totalorder (!%p351_p3), %s1394_s14, 1 }
   0x9   : > { %354 = sbr.rel (%p351_p3) target bundleno = 1054 (0x41e), region = 60  ;;  %p1172_p6 = scmp.ne.s32.totalorder (!%p351_p3), %s1390_s13, 0 }
   0xa   : > { %s1806_s19 = smov (%p34_p4, %s1804_s19), 0 }
   0xb   : > { %1794 = sst [smem:[#allocation7_spill]] %s1806_s19 }
  0x10   : > { %s1808_s14 = smov (!%p397_p5, %s1394_s14), 1  ;;  %419 = sbr.rel (%p1172_p6) target bundleno = 38 (0x26), region = 64 }
  0x11   : > { %s1507_s20 = sshll.u32 %s1808_s14, 3  ;;  %s415_s23 = scalar_lea.vmem %s1792_s10, %s1808_s14  ;;  %vm421_vm0 = vcmask (!%p1172_p6), 261120   ;;  %vm435_vm1 = vcmask (!%p1172_p6), 253952  }
  0x12   : > { %s400_s26 = scalar_lea.vmem %s1782_s0, %s1507_s20  ;;  %s404_s29 = scalar_lea.vmem %s1783_s1, %s1507_s20 }
  0x13   : > { %s408_s12 = scalar_lea.vmem %s1784_s2, %s1507_s20  ;;  %s412_s21 = scalar_lea.vmem %s1785_s3, %s1507_s20 }
  0x14   : > { %v420_v0 = vld [vmem:[%s408_s12] sm:$0xff] (!%p1172_p6) }
  0x15   : > { %v423_v1 = vld [vmem:[%s412_s21] sm:$0xff] (!%p1172_p6)  ;;  %422 = vst.msk [vmem:[#allocation2] sm:$0xff] (!%p1172_p6), %vm421_vm0, %v420_v0  ;;  %v426_v2 = vsel (!%p1172_p6), %vm421_vm0, %v420_v0, 0.0 }
  0x16   : > { %424 = vst.msk [vmem:[#allocation3] sm:$0xff] (!%p1172_p6), %vm421_vm0, %v423_v1  ;;  %v438_v3 = vsel (!%p1172_p6), %vm421_vm0, %v423_v1, 0.0  ;;  %v427_v4 = vrot.slane (!%p1172_p6), %v426_v2, 4 }
  0x17   : > { %v439_v5 = vrot.slane %v438_v3, 4 }
  0x18   : > { %v428_v6 = vadd.f32 %v427_v4, %v426_v2 }
  0x19   : > { %v440_v7 = vadd.f32 %v439_v5, %v438_v3 }
  0x1a   : > { %v429_v8 = vrot.slane %v428_v6, 2 }
  0x1b   : > { %v441_v9 = vrot.slane %v440_v7, 2 }
  0x1c   : > { %v430_v10 = vadd.f32 %v429_v8, %v428_v6 }
  0x1d   : > { %v442_v11 = vadd.f32 %v441_v9, %v440_v7 }
  0x1e   : > { %v431_v12 = vrot.slane %v430_v10, 1 }
  0x1f   : > { %v443_v13 = vrot.slane %v442_v11, 1 }
  0x20   : > { %v432_v14 = vadd.f32 %v431_v12, %v430_v10 }
  0x21   : > { %v444_v15 = vadd.f32 %v443_v13, %v442_v11 }
  0x22   : > { %v434_v16 = vmul.f32 0.125, %v432_v14 }
  0x23   : > { %v445_v17 = vmul.f32 0.125, %v444_v15 }
  0x24   : > { %436 = vst.msk [vmem:[#allocation4] sm:$0x1] %vm435_vm1, %v434_v16 }
  0x25   : > { %446 = vst.msk [vmem:[#allocation5] sm:$0x1] %vm435_vm1, %v445_v17 }
  0x26 PF: > { %v1530_v18 = vld [vmem:[%s404_s29] sm:$0xff]  ;;  %v454_v20 = vlaneseq  ;;  %v490_v23 = vld [vmem:[%s1786_s4 + $0x8] sm:$0xff]  ;;  %v492_v24 = vld [vmem:[%s1786_s4 + $0x18] sm:$0xff]  ;;  %v1408_v25 = vmov 0.0   ;;  %vm483_vm2 = vcmask 261120   ;;  %s1409_s28 = smov 96  }
  0x27   : > { %v470_v22 = vld [vmem:[%s400_s26] sm:$0xff]  ;;  %688 = vmatprep.mubr.f32.mxu1 %v1408_v25  ;;  %585 = vmatprep.mubr.f32.mxu0 %v1408_v25  ;;  %v1234_v27 = vpack.c.bf16 %v492_v24, %v490_v23  ;;  %v491_v29 = vld [vmem:[%s1786_s4 + $0x10] sm:$0xff]  ;;  %v494_v30 = vld [vmem:[%s1786_s4 + $0x28] sm:$0xff]  ;;  %s1410_s21 = smov 32   ;;  %v926_v37 = vsub.f32 1.0, %v1530_v18  ;;  %s1411_s11 = smov 64  }
  0x28   : > { %v1548_v26 = vshrl.u32 %v454_v20, 7  ;;  %480 = vrot.lane.b32.xlu1 %v470_v22, %s1409_s28  ;;  %v489_v28 = vld [vmem:[%s1786_s4] sm:$0xff]  ;;  %v496_v34 = vld [vmem:[%s1786_s4 + $0x38] sm:$0xff]  ;;  %v495_v36 = vld [vmem:[%s1786_s4 + $0x30] sm:$0xff]  ;;  %v1412_v17 = vmov 0.0|0.0   ;;  %vm1413_vm4 = vmmov 0  }
  0x29   : > { %v1236_v33 = vpack.c.bf16 %v491_v29, %v489_v28  ;;  %v493_v35 = vld [vmem:[%s1786_s4 + $0x20] sm:$0xff]  ;;  %1235 = vmatprep.subr.bf16.mxu0 %v1234_v27  ;;  %v1238_v38 = vpack.c.bf16 %v496_v34, %v494_v30  ;;  %v498_v39 = vld [vmem:[%s1786_s4 + $0x48] sm:$0xff]  ;;  %v500_v40 = vld [vmem:[%s1786_s4 + $0x58] sm:$0xff]  ;;  %v927_v52 = vmul.f32 1e+16, %v926_v37  ;;  %vm485_vm6 = vcmask 523264  }
  0x2a   : > { %vm459_vm3 = vcmp.lt.s32.totalorder %v1548_v26, 7  ;;  %v1240_v42 = vpack.c.bf16 %v495_v36, %v493_v35  ;;  %v1242_v45 = vpack.c.bf16 %v500_v40, %v498_v39  ;;  %v497_v46 = vld [vmem:[%s1786_s4 + $0x40] sm:$0xff]  ;;  %v499_v47 = vld [vmem:[%s1786_s4 + $0x50] sm:$0xff]  ;;  %v593_v48 = vld [vmem:[%s1787_s5 + $0x8] sm:$0xff]  ;;  %vm456_vm5 = vcmp.gt.s32.totalorder %v1548_v26, 0  ;;  %p1182_p7 = scmp.ne.s32.totalorder %s1390_s13, 1 }
  0x2b   : > { %v448_v19 = vld [vmem:[#allocation2] sm:$0xff]  ;;  %v1583_v41 = vsel %vm459_vm3, 1.0, %v1408_v25  ;;  %1237 = vmatpush1.bf16.msra.mxu0 %v1236_v33  ;;  %v502_v49 = vld [vmem:[%s1786_s4 + $0x68] sm:$0xff]  ;;  %v504_v50 = vld [vmem:[%s1786_s4 + $0x78] sm:$0xff]  ;;  %v1244_v56 = vpack.c.bf16 %v499_v47, %v497_v46  ;;  %vm487_vm7 = vcmask 785408   ;;  %vm517_vm8 = vcmask 916480  }
  0x2c   : > { %v1533_v21 = vmul.f32 %v448_v19, %v1530_v18  ;;  %1239 = vmatprep.subr.bf16.mxu0 %v1238_v38  ;;  %v596_v51 = vld [vmem:[%s1787_s5 + $0x20] sm:$0xff]  ;;  %v595_v55 = vld [vmem:[%s1787_s5 + $0x18] sm:$0xff]  ;;  %v602_v59 = vld [vmem:[%s1787_s5 + $0x50] sm:$0xff]  ;;  %929 = vrot.lane.b32.xlu1 %v927_v52, %s1409_s28  ;;  %v1246_v60 = vpack.c.bf16 %v504_v50, %v502_v49  ;;  %vm933_vm9 = vcmask 1048320   ;;  %vm983_vm10 = vcmask 253952  }
  0x2d   : > { %v1262_v53 = vpack.c.bf16 %v596_v51, %v593_v48  ;;  %v592_v54 = vld [vmem:[%s1787_s5] sm:$0xff]  ;;  %v599_v58 = vld [vmem:[%s1787_s5 + $0x38] sm:$0xff]  ;;  %v503_v62 = vld [vmem:[%s1786_s4 + $0x70] sm:$0xff]  ;;  %v1700_v48 = vsel %vm456_vm5, 1.0, %v1408_v25  ;;  %vm1415_vm11 = vmmov (!%p1182_p7), 0   ;;  %vm1067_vm12 = vcmask (!%p1182_p7), 24576  }
  0x2e   : > { %472 = vrot.lane.b32.xlu0 %v1533_v21, %s1410_s21  ;;  %v765_v31 = vsel %vm483_vm2, %v1533_v21, 0.0  ;;  %v464_v32 = vrot.slane %v1533_v21, 1  ;;  %v1264_v57 = vpack.c.bf16 %v595_v55, %v592_v54  ;;  %v501_v61 = vld [vmem:[%s1786_s4 + $0x60] sm:$0xff]  ;;  %v1266_v63 = vpack.c.bf16 %v602_v59, %v599_v58  ;;  %v598_v0 = vld [vmem:[%s1787_s5 + $0x30] sm:$0xff]  ;;  %v506_v2 = vld [vmem:[%s1786_s4 + $0x88] sm:$0xff] }
  0x2f   : > { %v766_v43 = vrot.slane %v765_v31, 4  ;;  %1241 = vmatpush1.bf16.msra.mxu0 %v1240_v42  ;;  %1263 = vmatprep.subr.bf16.mxu1 %v1262_v53  ;;  %v508_v3 = vld [vmem:[%s1786_s4 + $0x98] sm:$0xff]  ;;  %v601_v4 = vld [vmem:[%s1787_s5 + $0x48] sm:$0xff]  ;;  %v1248_v6 = vpack.c.bf16 %v503_v62, %v501_v61  ;;  %v594_v7 = vld [vmem:[%s1787_s5 + $0x10] sm:$0xff]  ;;  %v462_v47 = vrot.slane %v1533_v21, 7  ;;  %v1705_v21 = vsub.s32 0, %v1548_v26 }
  0x30   : > { %v465_v44 = vmul.f32 %v1583_v41, %v464_v32  ;;  %1243 = vmatprep.subr.bf16.mxu0 %v1242_v45  ;;  %1265 = vmatpush1.bf16.msra.mxu1 %v1264_v57  ;;  %v1268_v5 = vpack.c.bf16 %v601_v4, %v598_v0  ;;  %v1250_v8 = vpack.c.bf16 %v508_v3, %v506_v2  ;;  %v505_v9 = vld [vmem:[%s1786_s4 + $0x80] sm:$0xff]  ;;  %v507_v10 = vld [vmem:[%s1786_s4 + $0x90] sm:$0xff]  ;;  %v597_v11 = vld [vmem:[%s1787_s5 + $0x28] sm:$0xff]  ;;  %v612_v58 = vsub.s32 1, %v1548_v26 }
  0x31   : > { %v767_v1 = vadd.f32 %v766_v43, %v765_v31  ;;  %1267 = vmatprep.subr.bf16.mxu1 %v1266_v63  ;;  %v510_v13 = vld [vmem:[%s1786_s4 + $0xa8] sm:$0xff]  ;;  %v512_v14 = vld [vmem:[%s1786_s4 + $0xb8] sm:$0xff]  ;;  %v452_v15 = vld [vmem:[#allocation4] sm:$0x1]  ;;  %v1271_v16 = vpack.c.bf16 %v597_v11, %v594_v7  ;;  %v1252_v22 = vpack.c.bf16 %v507_v10, %v505_v9  ;;  %v463_v50 = vmul.f32 %v1700_v48, %v462_v47 }
  0x32   : > { %476 = vrot.lane.b32.xlu0 %v465_v44, %s1411_s11  ;;  %v600_v19 = vld [vmem:[%s1787_s5 + $0x40] sm:$0xff]  ;;  %v603_v20 = vld [vmem:[%s1787_s5 + $0x58] sm:$0xff]  ;;  %v1254_v23 = vpack.c.bf16 %v512_v14, %v510_v13  ;;  %v511_v27 = vld [vmem:[%s1786_s4 + $0xb0] sm:$0xff] }
  0x33   : > { %1245 = vmatpush1.bf16.msra.mxu0 %v1244_v56  ;;  %v768_v12 = vrot.slane %v767_v1, 2  ;;  %v509_v24 = vld [vmem:[%s1786_s4 + $0xa0] sm:$0xff]  ;;  %v514_v29 = vld [vmem:[%s1786_s4 + $0xc8] sm:$0xff]  ;;  %v516_v30 = vld [vmem:[%s1786_s4 + $0xd8] sm:$0xff]  ;;  %v1274_v31 = vpack.c.bf16 %v603_v20, %v600_v19 }
  0x34   : > { %1247 = vmatprep.subr.bf16.mxu0 %v1246_v60  ;;  %1269 = vmatpush1.bf16.msra.mxu1 %v1268_v5  ;;  %v774_v32 = vld [vmem:[%s1789_s7] sm:$0xff]  ;;  %v775_v33 = vld [vmem:[%s1789_s7 + $0x8] sm:$0xff]  ;;  %v1256_v34 = vpack.c.bf16 %v511_v27, %v509_v24  ;;  %v1258_v35 = vpack.c.bf16 %v516_v30, %v514_v29  ;;  %v515_v37 = vld [vmem:[%s1786_s4 + $0xd0] sm:$0xff] }
  0x35   : > { %1270 = vmatprep.subr.bf16.mxu1 %v1412_v17  ;;  %v769_v28 = vadd.f32 %v768_v12, %v767_v1  ;;  %v513_v36 = vld [vmem:[%s1786_s4 + $0xc0] sm:$0xff]  ;;  %v1277_v39 = vpack.c.bf16 %v775_v33, %v774_v32  ;;  %v776_v40 = vld [vmem:[%s1789_s7 + $0x10] sm:$0xff]  ;;  %v777_v42 = vld [vmem:[%s1789_s7 + $0x18] sm:$0xff] }
  0x36   : > { %v1260_v43 = vpack.c.bf16 %v515_v37, %v513_v36  ;;  %v1280_v45 = vpack.c.bf16 %v777_v42, %v776_v40 }
  0x37   : > { %1249 = vmatpush1.bf16.msra.mxu0 %v1248_v6  ;;  %1176 = vmatmul.mubr.msk.f32.vlgmr.msra.gmra.mrb[0].mxu1 %vm483_vm2, %v452_v15  ;;  %v770_v38 = vrot.slane %v769_v28, 1 }
  0x38   : > { %1251 = vmatprep.subr.bf16.mxu0 %v1250_v8  ;;  %1272 = vmatpush3.bf16.msra.mxu1 %v1271_v16 }
  0x39   : > { %1209 = vmatprep.mubr.msk.f32.mxu1 %vm1413_vm4, %v1408_v25  ;;  %1273 = vmatprep.subr.bf16.mxu1 %v1412_v17  ;;  %v771_v44 = vadd.f32 %v770_v38, %v769_v28 }
  0x3b   : > { %1253 = vmatpush1.bf16.msra.mxu0 %v1252_v22  ;;  %v773_v46 = vmul.f32 0.125, %v771_v44 }
  0x3c   : > { %1255 = vmatprep.subr.bf16.mxu0 %v1254_v23  ;;  %1275 = vmatpush3.bf16.msra.mxu1 %v1274_v31 }
  0x3d   : > { %1276 = vmatprep.subr.bf16.mxu1 %v1412_v17 }
  0x3f   : > { %1257 = vmatpush1.bf16.msra.mxu0 %v1256_v34  ;;  %1210 = vmatmul.mubr.msk.f32.vlgmr.msra.gmra.mrb[2].mxu1 %vm483_vm2, %v452_v15 }
  0x40   : > { %1259 = vmatprep.subr.bf16.mxu0 %v1258_v35  ;;  %1278 = vmatpush3.bf16.msra.mxu1 %v1277_v39 }
  0x41   : > { %1220 = vmatprep.mubr.msk.f32.mxu1 %vm1413_vm4, %v1408_v25  ;;  %1279 = vmatprep.subr.bf16.mxu1 %v1412_v17  ;;  %v1710_v25 = vld [vmem:[%s1788_s6] sm:$0x7] }
  0x42   : > { %v609_v59 = vrot.slane %v1710_v25, %v1705_v21  ;;  %v613_v60 = vrot.slane %v1710_v25, %v612_v58 }
  0x43   : > { %1261 = vmatpush1.bf16.msra.mxu0 %v1260_v43  ;;  %v450_v43 = vld [vmem:[#allocation3] sm:$0xff] }
  0x44   : > { %1281 = vmatpush3.bf16.msra.mxu1 %v1280_v45  ;;  %v451_v45 = vmul.f32 %v450_v43, %v1530_v18  ;;  %v994_v43 = vld [vmem:[%s1791_s9] sm:$0x1] (!%p1182_p7) }
  0x46   : > { %v468_v47 = vrot.slane %v451_v45, 1 }
  0x47   : > { %1221 = vmatmul.mubr.msk.f32.vlgmr.msra.gmra.mrb[2].mxu1 %vm483_vm2, %v773_v46  ;;  %v466_v46 = vrot.slane %v451_v45, 7 }
  0x9a   : > { %v481_v51 = vpop.permute.xlu1 %480 }
  0x9e   : > { %v930_v11 = vpop.permute.xlu1 %929 }
  0xa0   : > { %v473_v49 = vpop.permute.xlu0 %472 }
  0xa1   : > { %v484_v52 = vsel %vm483_vm2, %v463_v50, %v473_v49 }
  0xa4   : > { %v477_v53 = vpop.permute.xlu0 %476 }
  0xa5   : > { %v486_v54 = vsel %vm485_vm6, %v484_v52, %v477_v53  ;;  %v467_v52 = vmul.f32 %v1700_v48, %v466_v46 }
  0xa6   : > { %v488_v55 = vsel %vm487_vm7, %v486_v54, %v481_v51 }
  0xa7   : > { %1175 = vmatmul.mubr.msk.f32.vlgmr.msra.gmra.mrb[0].mxu0 %vm517_vm8, %v488_v55  ;;  %v453_v55 = vld [vmem:[#allocation5] sm:$0x1] }
 0x10a   : > { %v690_v56 = vpop.f32.mrb[0].mxu1 }
 0x10b   : > { %v692_v57 = vpop.f32.mrb[1].mxu1  ;;  %v691_v61 = vadd.f32 %v690_v56, %v609_v59  ;;  %v469_v56 = vmul.f32 %v1583_v41, %v468_v47 }
 0x10c   : > { %v693_v62 = vadd.f32 %v692_v57, %v613_v60 }
 0x10d   : > { %v854_v63 = vrot.slane %v691_v61, %v1705_v21  ;;  %v902_v61 = vrot.slane %v453_v55, %v1705_v21 }
 0x10e   : > { %v858_v0 = vrot.slane %v693_v62, %v1705_v21 }
 0x11a   : > { %v847_v22 = vpop.f32.mrb[2].mxu1 }
 0x11b   : > { %v1222_v23 = vpop.f32.mrb[3].mxu1 }
 0x17a   : > { %v587_v1 = vpop.f32.mrb[0].mxu0 }
 0x17b   : > { %v859_v2 = vadd.f32 %v854_v63, %v587_v1  ;;  %v589_v3 = vpop.f32.mrb[1].mxu0 }
 0x17c   : > { %v1718_v4 = vadd.f32 %v858_v0, %v589_v3  ;;  %v616_v3 = vsub.s32 2, %v1548_v26 }
 0x17d   : > { %v1179_v5 = vmul.f32 -1.442695, %v859_v2 }
 0x17e   : > { %v1180_v6 = vmul.f32 -1.442695, %v1718_v4  ;;  %v617_v41 = vrot.slane %v1710_v25, %v616_v3 }
 0x17f   : > { %1340 = vpow2.f32 %v1179_v5 }
 0x180   : > { %1342 = vpow2.f32 %v1180_v6  ;;  %v1288_v6 = vadd.f32 %v847_v22, %v617_v41 }
 0x189   : > { %v1341_v7 = vpop.eup %1340 }
 0x18a   : > { %v1343_v8 = vpop.eup %1342  ;;  %v867_v9 = vadd.f32 1.0, %v1341_v7  ;;  %v1181_v7 = vmul.f32 -1.442695, %v1288_v6 }
 0x18b   : > { %v868_v10 = vadd.f32 1.0, %v1343_v8 }
 0x18c   : > { %1344 = vrcp.f32 %v867_v9 }
 0x18d   : > { %1346 = vrcp.f32 %v868_v10 }
 0x196   : > { %v1345_v12 = vpop.eup %1344 }
 0x197   : > { %v1347_v13 = vpop.eup %1346  ;;  %v873_v14 = vmul.f32 1.442695, %v1345_v12 }
 0x198   : > { %v932_v15 = vsub.f32 %v1347_v13, %v930_v11  ;;  %v875_v44 = vmul.f32 1.442695, %v1347_v13 }
 0x199   : > { %1348 = vpow2.f32 %v873_v14 }
 0x19a   : > { %v934_v16 = vsel %vm933_vm9, %v932_v15, -inf }
 0x19b   : > { %v935_v17 = vrot.slane %v934_v16, 4 }
 0x19d   : > { %v936_v19 = vmax.f32 %v934_v16, %v935_v17 }
 0x19f   : > { %v937_v20 = vrot.slane %v936_v19, 2 }
 0x1a1   : > { %v938_v24 = vmax.f32 %v936_v19, %v937_v20 }
 0x1a3   : > { %v1349_v27 = vpop.eup %1348  ;;  %v939_v28 = vrot.slane %v938_v24, 1 }
 0x1a4   : > { %878 = vrot.lane.b32.xlu1 %v1349_v27, %s1409_s28  ;;  %882 = vrot.lane.b32.xlu0 %v1349_v27, %s1411_s11 }
 0x1a5   : > { %v940_v29 = vmax.f32 %v938_v24, %v939_v28 }
 0x1a7   : > { %v941_v30 = vsub.f32 %v932_v15, %v940_v29 }
 0x1a8   : > { %886 = vrot.lane.b32.xlu0 %v1349_v27, %s1410_s21 }
 0x1a9   : > { %v942_v31 = vmul.f32 1.442695, %v941_v30 }
 0x1ab   : > { %1350 = vpow2.f32 %v942_v31 }
 0x1b5   : > { %v1351_v32 = vpop.eup %1350 }
 0x1b6   : > { %v944_v33 = vsel %vm933_vm9, %v1351_v32, 0.0 }
 0x1b7   : > { %v945_v34 = vrot.slane %v944_v33, 4 }
 0x1b9   : > { %v946_v35 = vadd.f32 %v945_v34, %v944_v33 }
 0x1bb   : > { %v947_v36 = vrot.slane %v946_v35, 2 }
 0x1bd   : > { %v948_v37 = vadd.f32 %v947_v36, %v946_v35  ;;  %v990_v35 = vld [vmem:[%s1790_s8] sm:$0xff] (!%p1182_p7)  ;;  %v991_v36 = vld [vmem:[%s1790_s8 + $0x8] sm:$0xff] (!%p1182_p7) }
 0x1bf   : > { %v949_v38 = vrot.slane %v948_v37, 1 }
 0x1c1   : > { %v950_v39 = vadd.f32 %v949_v38, %v948_v37  ;;  %v1414_v37 = vmov (!%p1182_p7), 0.0|0.0   ;;  %v1283_v38 = vpack.c.bf16 (!%p1182_p7), %v991_v36, %v990_v35 }
 0x1c2   : > { %1282 = vmatprep.subr.bf16.mxu0 (!%p1182_p7), %v1414_v37 }
 0x1c3   : > { %1352 = vrcp.f32 %v950_v39  ;;  %v993_v39 = vld [vmem:[%s1790_s8 + $0x18] sm:$0xff] (!%p1182_p7)  ;;  %1284 = vmatpush3.bf16.msra.mxu0 (!%p1182_p7), %v1283_v38 }
 0x1c4   : > { %1354 = vtanh.f32 %v1718_v4  ;;  %1285 = vmatprep.subr.bf16.mxu0 (!%p1182_p7), %v1414_v37 }
 0x1c5   : > { %1356 = vpow2.f32 %v875_v44 }
 0x1c6   : > { %1358 = vpow2.f32 %v1181_v7 }
 0x1cd   : > { %v1353_v40 = vpop.eup %1352 }
 0x1ce   : > { %v952_v42 = vmul.f32 %v1353_v40, %v1351_v32  ;;  %v1355_v49 = vpop.eup %1354  ;;  %v1416_v40 = vmov (!%p1182_p7), 0.0  }
 0x1cf   : > { %v1357_v62 = vpop.eup %1356  ;;  %1231 = vmatprep.mubr.msk.f32.mxu0 (!%p1182_p7), %vm1415_vm11, %v1416_v40 }
 0x1d0   : > { %955 = vrot.lane.b32.xlu1 %v952_v42, %s1410_s21  ;;  %v904_v48 = vmul.f32 %v1357_v62, %v902_v61  ;;  %v1359_v8 = vpop.eup %1358 }
 0x1d1   : > { %v923_v9 = vadd.f32 1.0, %v1359_v8 }
 0x1d3   : > { %1360 = vrcp.f32 %v923_v9 }
 0x1dd   : > { %v1361_v15 = vpop.eup %1360 }
 0x1de   : > { %v953_v17 = vmul.f32 %v1361_v15, %v453_v55 }
 0x216   : > { %v879_v50 = vpop.permute.xlu1 %878  ;;  %v883_v51 = vpop.permute.xlu0 %882 }
 0x217   : > { %v881_v53 = vadd.f32 %v1349_v27, %v879_v50  ;;  %v906_v54 = vmul.f32 %v1355_v49, %v883_v51  ;;  %v893_v59 = vmul.f32 %v879_v50, %v467_v52  ;;  %v896_v63 = vmul.f32 %v883_v51, %v469_v56 }
 0x219   : > { %v885_v57 = vadd.f32 %v883_v51, %v881_v53  ;;  %908 = vrot.lane.b32.xlu0 %v906_v54, %s1411_s11 }
 0x21a   : > { %v887_v58 = vpop.permute.xlu0 %886 }
 0x21b   : > { %v889_v60 = vadd.f32 %v887_v58, %v885_v57  ;;  %v894_v18 = vmul.f32 %v887_v58, %v451_v45 }
 0x21d   : > { %v890_v0 = vadd.f32 %v1357_v62, %v889_v60  ;;  %v895_v1 = vadd.f32 %v894_v18, %v893_v59 }
 0x21f   : > { %v897_v2 = vadd.f32 %v896_v63, %v895_v1 }
 0x221   : > { %v905_v5 = vadd.f32 %v904_v48, %v897_v2 }
 0x242   : > { %v956_v10 = vpop.permute.xlu1 %955 }
 0x243   : > { %v958_v11 = vmul.f32 %v956_v10, %v451_v45 }
 0x245   : > { %v959_v21 = vsel %vm483_vm2, %v958_v11, 0.0 }
 0x246   : > { %v960_v12 = vrot.slane %v959_v21, 4 }
 0x248   : > { %v961_v13 = vadd.f32 %v960_v12, %v959_v21 }
 0x24a   : > { %v962_v14 = vrot.slane %v961_v13, 2 }
 0x24c   : > { %v963_v16 = vadd.f32 %v962_v14, %v961_v13 }
 0x24e   : > { %v964_v26 = vrot.slane %v963_v16, 1 }
 0x250   : > { %v965_v19 = vadd.f32 %v964_v26, %v963_v16 }
 0x252   : > { %v966_v25 = vadd.f32 %v965_v19, %v953_v17 }
 0x254   : > { %1362 = vtanh.f32 %v966_v25  ;;  %985 = vst.msk [vmem:[#allocation5] sm:$0x1] %vm983_vm10, %v966_v25 }
 0x255   : > { %1364 = vrcp.f32 %v890_v0 }
 0x25e   : > { %v1363_v20 = vpop.eup %1362 }
 0x25f   : > { %969 = vrot.lane.b32.xlu0 %v1363_v20, %s1410_s21  ;;  %v1365_v24 = vpop.eup %1364 }
 0x28b   : > { %v909_v22 = vpop.permute.xlu0 %908 }
 0x28c   : > { %v911_v23 = vadd.f32 %v909_v22, %v905_v5 }
 0x28e   : > { %v912_v27 = vmul.f32 %v1365_v24, %v911_v23 }
 0x290   : > { %1366 = vtanh.f32 %v912_v27  ;;  %978 = vst.msk [vmem:[#allocation3] sm:$0xff] %vm483_vm2, %v912_v27 }
 0x29a   : > { %v1367_v28 = vpop.eup %1366 }
 0x29b   : > { %915 = vrot.lane.b32.xlu1 %v1367_v28, %s1410_s21 }
 0x2d1   : > { %v970_v29 = vpop.permute.xlu0 %969 }
 0x2d2   : > { %v972_v30 = vmul.f32 %v1361_v15, %v970_v29 }
 0x2d4   : > { %980 = vrot.lane.b32.xlu0 %v972_v30, %s1409_s28 }
 0x30d   : > { %v916_v31 = vpop.permute.xlu1 %915 }
 0x30e   : > { %v918_v32 = vmul.f32 %v916_v31, %v1718_v4  ;;  %v992_v4 = vld [vmem:[%s1790_s8 + $0x10] sm:$0xff] (!%p1182_p7) }
 0x30f   : > { %v1286_v42 = vpack.c.bf16 (!%p1182_p7), %v993_v39, %v992_v4 }
 0x310   : > { %974 = vrot.lane.b32.xlu1 %v918_v32, %s1409_s28 }
 0x311   : > { %1287 = vmatpush3.bf16.msra.mxu0 (!%p1182_p7), %v1286_v42 }
 0x346   : > { %v981_v33 = vpop.permute.xlu0 %980 }
 0x347   : > { %984 = vst.msk [vmem:[#allocation4] sm:$0x1] %vm983_vm10, %v981_v33  ;;  %1232 = vmatmul.mubr.msk.f32.vlgmr.msra.gmra.mrb[0].mxu0 (!%p1182_p7), %vm483_vm2, %v981_v33 }
 0x37d   : > { %989 = sbr.rel (%p1182_p7) target bundleno = 1054 (0x41e), region = 68 }
 0x382   : > { %v975_v34 = vpop.permute.xlu1 %974 }
 0x383   : > { %977 = vst.msk [vmem:[#allocation2] sm:$0xff] %vm483_vm2, %v975_v34 }
 0x41a   : > { %v1063_v44 = vpop.f32.mrb[0].mxu0 }
 0x41b   : > { %v1064_v45 = vadd.f32 %v1063_v44, %v994_v43  ;;  %v1233_v46 = vpop.f32.mrb[1].mxu0 }
 0x41d   : > { %1068 = vst.msk [vmem:[%s415_s23] sm:$0x1] %vm1067_vm12, %v1064_v45 }
 0x41e PF: > { %s20_s17 = sadd.s32 1, %s1406_s17   ;;  %s1795_s12 = sld [smem:[#allocation6_spill]] }
 0x41f   : > { %p17_p8 = scmp.ge.s32.totalorder %s20_s17, 6   ;;  %s1796_s18 = sld [smem:[#allocation7_spill]] }
 0x420   : > { %s1797_s13 = smov %s1398_s15  ;;  %s1798_s14 = smov %s1402_s16 }
 0x421   :  { %19 = sbr.rel (!%p17_p8) target bundleno = 3 (0x3), region = 107 }
 0x424   : > { %s1799_s15 = smov %s1795_s12 }
 0x425   : > { %s1800_s16 = smov %s1796_s18 }

</bundles_post_ra>
